<compile_context>
chip_gen: v7x
topology: tpu7x:2x2x1
jax: 0.10.0
libtpu: 0.0.40
codegen_flags: <defaults>
</compile_context>

<pallas_src>
import jax
import jax.numpy as jnp
from jax.experimental import pallas as pl
from jax.experimental.pallas import tpu as pltpu


def _round_up(x, m):
    return ((x + m - 1) // m) * m


_UNROLL = 8  # tokens_per_block is always a multiple of 8


def _make_resident_kernel(tokens_per_block):
    """Gather rows from a VMEM-resident embedding table (small tables)."""

    def kernel(ids_ref, table_ref, out_ref):
        base = pl.program_id(0) * tokens_per_block

        # Unroll by 8: amortizes per-iteration loop overhead over 8
        # (row-load + row-store) pairs; row addresses come from SMEM ids.
        @pl.loop(0, tokens_per_block // _UNROLL)
        def _(jo):
            j0 = jo * _UNROLL
            for u in range(_UNROLL):
                j = j0 + u
                tid = ids_ref[base + j]                      # SMEM scalar read
                out_ref[pl.ds(j, 1), :] = table_ref[pl.ds(tid, 1), :]

    return kernel


def _make_hbm_gather_kernel(tokens_per_block, nbuf):
    """Gather rows from an HBM-resident table with a ring of async DMAs that
    land directly in the output's VMEM block (no staging copy)."""
    nprime = min(nbuf, tokens_per_block)

    def kernel(ids_ref, table_hbm, out_ref, copy_sems):
        base = pl.program_id(0) * tokens_per_block

        def issue(j):
            tid = ids_ref[base + j]
            pltpu.make_async_copy(
                table_hbm.at[pl.ds(tid, 1)],
                out_ref.at[pl.ds(j, 1)],
                copy_sems.at[j % nbuf],
            ).start()

        def wait_slot(slot):
            # Same-shape src/dst descriptor: only the semaphore and the byte
            # count (one table row) matter for the wait.
            pltpu.make_async_copy(
                table_hbm.at[pl.ds(0, 1)],
                out_ref.at[pl.ds(0, 1)],
                copy_sems.at[slot],
            ).wait()

        # Prime the ring with up to `nbuf` outstanding row DMAs.
        @pl.loop(0, nprime)
        def _(j):
            issue(j)

        # Steady state: wait for the slot's previous DMA, then reuse it.
        @pl.loop(nprime, tokens_per_block)
        def _(j):
            wait_slot(j % nbuf)
            issue(j)

        # Drain the remaining outstanding DMAs before the block is written back.
        @pl.loop(tokens_per_block - nprime, tokens_per_block)
        def _(j):
            wait_slot(j % nbuf)

    return kernel


def embedding_forward(ids, table, *, block_tokens=None, prefer_resident=None,
                      nbuf=8):
    """ids: integer array of any shape; table: (vocab_size, embedding_s)."""
    orig_shape = ids.shape
    vocab_size, embedding_s = table.shape

    flat_ids = ids.reshape(-1).astype(jnp.int32)
    # TODO(synk): PyTorch nn.Embedding raises on out-of-range ids; we clamp
    # instead so a bad id can never drive an out-of-bounds HBM DMA.
    flat_ids = jnp.clip(flat_ids, 0, vocab_size - 1)
    num_tokens = int(flat_ids.shape[0])

    dtype_bytes = jnp.dtype(table.dtype).itemsize
    # Sublane packing: 8 rows/vreg for 4-byte dtypes, 16 for 2-byte, 32 for 1-byte.
    sublane = max(8, 32 // max(dtype_bytes, 1))
    lane = 128

    row_bytes = embedding_s * dtype_bytes
    if block_tokens is None:
        # Cap the output block at ~2 MiB so its double buffer stays small.
        cap = max(sublane, ((2 << 20) // max(row_bytes, 1) // sublane) * sublane)
        tokens_per_block = min(512, cap, _round_up(num_tokens, sublane))
    else:
        tokens_per_block = _round_up(block_tokens, sublane)
    tokens_per_block = max(sublane, (tokens_per_block // sublane) * sublane)

    num_padded = _round_up(num_tokens, tokens_per_block)
    if num_padded != num_tokens:
        flat_ids = jnp.concatenate(
            [flat_ids, jnp.zeros((num_padded - num_tokens,), jnp.int32)])
    grid = (num_padded // tokens_per_block,)
    # TODO(synk): very large token counts will overflow SMEM for the prefetched
    # ids; chunk the call in the wrapper if that regime matters.

    # Generation-aware VMEM budget (v7x: 64 MiB physical, v5e/v6e: 128 MiB).
    try:
        vmem_cap = int(pltpu.get_tpu_info().vmem_capacity_bytes)
    except Exception:
        vmem_cap = 64 * 1024 * 1024

    padded_rows = _round_up(vocab_size, sublane)
    padded_cols = _round_up(embedding_s, lane)
    table_vmem_bytes = padded_rows * padded_cols * dtype_bytes
    out_block_bytes = tokens_per_block * padded_cols * dtype_bytes

    # Assume both the table block and the output block get double-buffered.
    resident_need = 2 * table_vmem_bytes + 2 * out_block_bytes + (2 << 20)
    budget = int(vmem_cap * 0.85)
    resident = (resident_need <= budget) if prefer_resident is None else prefer_resident

    out_spec = pl.BlockSpec((tokens_per_block, embedding_s),
                            lambda i, ids_s: (i, 0))

    if resident:
        kernel = _make_resident_kernel(tokens_per_block)
        in_specs = [pl.BlockSpec((vocab_size, embedding_s),
                                 lambda i, ids_s: (0, 0))]
        scratch_shapes = []
        vmem_limit = min(vmem_cap, max(32 << 20, resident_need))
    else:
        kernel = _make_hbm_gather_kernel(tokens_per_block, nbuf)
        in_specs = [pl.BlockSpec(memory_space=pl.ANY)]      # table stays in HBM
        scratch_shapes = [pltpu.SemaphoreType.DMA((nbuf,))]
        vmem_limit = min(vmem_cap, max(32 << 20, 2 * out_block_bytes + (4 << 20)))

    compiler_params = pltpu.CompilerParams(
        dimension_semantics=("parallel",),
        vmem_limit_bytes=vmem_limit,
    )

    grid_spec = pltpu.PrefetchScalarGridSpec(
        num_scalar_prefetch=1,            # flat_ids -> SMEM, drives the gather
        grid=grid,
        in_specs=in_specs,
        out_specs=out_spec,
        scratch_shapes=scratch_shapes,
    )

    out = pl.pallas_call(
        kernel,
        out_shape=jax.ShapeDtypeStruct((num_padded, embedding_s), table.dtype),
        grid_spec=grid_spec,
        compiler_params=compiler_params,
    )(flat_ids, table)

    return out[:num_tokens].reshape(*orig_shape, embedding_s)


if __name__ == "__main__":
    vocab_size = 32
    embedding_s = 128   # lane-aligned embedding width
    batch, seq = 2, 8

    key = jax.random.PRNGKey(0)
    k_table, k_ids = jax.random.split(key)

    # nn.Embedding default init: weight ~ N(0, 1)
    table = jax.random.normal(k_table, (vocab_size, embedding_s), dtype=jnp.float32)
    x = jax.random.randint(k_ids, (batch, seq), 0, vocab_size, dtype=jnp.int32)

    ref = jnp.take(table, x, axis=0)

    # Fast path: whole table resident in VMEM.
    out = jax.block_until_ready(embedding_forward(x, table))
    assert out.shape == (batch, seq, embedding_s), out.shape
    assert jnp.allclose(out, ref), "embedding mismatch (VMEM-resident path)"

    # Large-table path exercised at small size: HBM table + DMA-ring gather.
    out_hbm = jax.block_until_ready(
        embedding_forward(x, table, prefer_resident=False))
    assert jnp.allclose(out_hbm, ref), "embedding mismatch (HBM-gather path)"

    print("KERNEL_OK")
</pallas_src>

<mosaic_0001>
module attributes {stable_mosaic.version = 11 : i64} {
  func.func @kernel(%arg0: i32, %arg1: memref<16xi32, #tpu.memory_space<smem>>, %arg2: memref<32x128xf32, #tpu.memory_space<vmem>>, %arg3: memref<16x128xf32, #tpu.memory_space<vmem>>) attributes {dimension_semantics = [#tpu.dimension_semantics<parallel>], iteration_bounds = array<i64: 1>, scalar_prefetch = 1 : i64, scratch_operands = 0 : i64, tpu.core_type = #tpu.core_type<tc>, window_params = [{pipeline_mode = #tpu.pipeline_mode<synchronous>, transform_indices = @transform_0, window_bounds = array<i64: 32, 128>}, {transform_indices = @transform_1, window_bounds = array<i64: 16, 128>}]} {
    %c16_i32 = arith.constant 16 : i32
    %0 = arith.muli %arg0, %c16_i32 : i32
    %c0_i32 = arith.constant 0 : i32
    %c2_i32 = arith.constant 2 : i32
    %1 = arith.addi %c0_i32, %c2_i32 : i32
    %c1_i32 = arith.constant 1 : i32
    scf.for %arg4 = %c0_i32 to %1 step %c1_i32  : i32 {
      %c1_i32_1 = arith.constant 1 : i32
      %2 = arith.muli %arg4, %c1_i32_1 : i32
      %c0_i32_2 = arith.constant 0 : i32
      %3 = arith.addi %c0_i32_2, %2 : i32
      %c8_i32 = arith.constant 8 : i32
      %4 = arith.muli %3, %c8_i32 : i32
      %c0_i32_3 = arith.constant 0 : i32
      %5 = arith.addi %4, %c0_i32_3 : i32
      %6 = arith.addi %0, %5 : i32
      %7 = arith.index_cast %6 : i32 to index
      %8 = memref.load %arg1[%7] : memref<16xi32, #tpu.memory_space<smem>>
      %9 = arith.index_cast %8 : i32 to index
      %c0 = arith.constant 0 : index
      %10 = vector.load %arg2[%9, %c0] : memref<32x128xf32, #tpu.memory_space<vmem>>, vector<1x128xf32>
      %11 = arith.index_cast %5 : i32 to index
      %c0_4 = arith.constant 0 : index
      %12 = vector.load %arg3[%11, %c0_4] : memref<16x128xf32, #tpu.memory_space<vmem>>, vector<1x128xf32>
      tpu.vector_store %arg3[%11, %c0_4], %10 {strides = array<i32>} : memref<16x128xf32, #tpu.memory_space<vmem>>, vector<1x128xf32>,
      %c1_i32_5 = arith.constant 1 : i32
      %13 = arith.addi %4, %c1_i32_5 : i32
      %14 = arith.addi %0, %13 : i32
      %15 = arith.index_cast %14 : i32 to index
      %16 = memref.load %arg1[%15] : memref<16xi32, #tpu.memory_space<smem>>
      %17 = arith.index_cast %16 : i32 to index
      %c0_6 = arith.constant 0 : index
      %18 = vector.load %arg2[%17, %c0_6] : memref<32x128xf32, #tpu.memory_space<vmem>>, vector<1x128xf32>
      %19 = arith.index_cast %13 : i32 to index
      %c0_7 = arith.constant 0 : index
      %20 = vector.load %arg3[%19, %c0_7] : memref<16x128xf32, #tpu.memory_space<vmem>>, vector<1x128xf32>
      tpu.vector_store %arg3[%19, %c0_7], %18 {strides = array<i32>} : memref<16x128xf32, #tpu.memory_space<vmem>>, vector<1x128xf32>,
      %c2_i32_8 = arith.constant 2 : i32
      %21 = arith.addi %4, %c2_i32_8 : i32
      %22 = arith.addi %0, %21 : i32
      %23 = arith.index_cast %22 : i32 to index
      %24 = memref.load %arg1[%23] : memref<16xi32, #tpu.memory_space<smem>>
      %25 = arith.index_cast %24 : i32 to index
      %c0_9 = arith.constant 0 : index
      %26 = vector.load %arg2[%25, %c0_9] : memref<32x128xf32, #tpu.memory_space<vmem>>, vector<1x128xf32>
      %27 = arith.index_cast %21 : i32 to index
      %c0_10 = arith.constant 0 : index
      %28 = vector.load %arg3[%27, %c0_10] : memref<16x128xf32, #tpu.memory_space<vmem>>, vector<1x128xf32>
      tpu.vector_store %arg3[%27, %c0_10], %26 {strides = array<i32>} : memref<16x128xf32, #tpu.memory_space<vmem>>, vector<1x128xf32>,
      %c3_i32 = arith.constant 3 : i32
      %29 = arith.addi %4, %c3_i32 : i32
      %30 = arith.addi %0, %29 : i32
      %31 = arith.index_cast %30 : i32 to index
      %32 = memref.load %arg1[%31] : memref<16xi32, #tpu.memory_space<smem>>
      %33 = arith.index_cast %32 : i32 to index
      %c0_11 = arith.constant 0 : index
      %34 = vector.load %arg2[%33, %c0_11] : memref<32x128xf32, #tpu.memory_space<vmem>>, vector<1x128xf32>
      %35 = arith.index_cast %29 : i32 to index
      %c0_12 = arith.constant 0 : index
      %36 = vector.load %arg3[%35, %c0_12] : memref<16x128xf32, #tpu.memory_space<vmem>>, vector<1x128xf32>
      tpu.vector_store %arg3[%35, %c0_12], %34 {strides = array<i32>} : memref<16x128xf32, #tpu.memory_space<vmem>>, vector<1x128xf32>,
      %c4_i32 = arith.constant 4 : i32
      %37 = arith.addi %4, %c4_i32 : i32
      %38 = arith.addi %0, %37 : i32
      %39 = arith.index_cast %38 : i32 to index
      %40 = memref.load %arg1[%39] : memref<16xi32, #tpu.memory_space<smem>>
      %41 = arith.index_cast %40 : i32 to index
      %c0_13 = arith.constant 0 : index
      %42 = vector.load %arg2[%41, %c0_13] : memref<32x128xf32, #tpu.memory_space<vmem>>, vector<1x128xf32>
      %43 = arith.index_cast %37 : i32 to index
      %c0_14 = arith.constant 0 : index
      %44 = vector.load %arg3[%43, %c0_14] : memref<16x128xf32, #tpu.memory_space<vmem>>, vector<1x128xf32>
      tpu.vector_store %arg3[%43, %c0_14], %42 {strides = array<i32>} : memref<16x128xf32, #tpu.memory_space<vmem>>, vector<1x128xf32>,
      %c5_i32 = arith.constant 5 : i32
      %45 = arith.addi %4, %c5_i32 : i32
      %46 = arith.addi %0, %45 : i32
      %47 = arith.index_cast %46 : i32 to index
      %48 = memref.load %arg1[%47] : memref<16xi32, #tpu.memory_space<smem>>
      %49 = arith.index_cast %48 : i32 to index
      %c0_15 = arith.constant 0 : index
      %50 = vector.load %arg2[%49, %c0_15] : memref<32x128xf32, #tpu.memory_space<vmem>>, vector<1x128xf32>
      %51 = arith.index_cast %45 : i32 to index
      %c0_16 = arith.constant 0 : index
      %52 = vector.load %arg3[%51, %c0_16] : memref<16x128xf32, #tpu.memory_space<vmem>>, vector<1x128xf32>
      tpu.vector_store %arg3[%51, %c0_16], %50 {strides = array<i32>} : memref<16x128xf32, #tpu.memory_space<vmem>>, vector<1x128xf32>,
      %c6_i32 = arith.constant 6 : i32
      %53 = arith.addi %4, %c6_i32 : i32
      %54 = arith.addi %0, %53 : i32
      %55 = arith.index_cast %54 : i32 to index
      %56 = memref.load %arg1[%55] : memref<16xi32, #tpu.memory_space<smem>>
      %57 = arith.index_cast %56 : i32 to index
      %c0_17 = arith.constant 0 : index
      %58 = vector.load %arg2[%57, %c0_17] : memref<32x128xf32, #tpu.memory_space<vmem>>, vector<1x128xf32>
      %59 = arith.index_cast %53 : i32 to index
      %c0_18 = arith.constant 0 : index
      %60 = vector.load %arg3[%59, %c0_18] : memref<16x128xf32, #tpu.memory_space<vmem>>, vector<1x128xf32>
      tpu.vector_store %arg3[%59, %c0_18], %58 {strides = array<i32>} : memref<16x128xf32, #tpu.memory_space<vmem>>, vector<1x128xf32>,
      %c7_i32 = arith.constant 7 : i32
      %61 = arith.addi %4, %c7_i32 : i32
      %62 = arith.addi %0, %61 : i32
      %63 = arith.index_cast %62 : i32 to index
      %64 = memref.load %arg1[%63] : memref<16xi32, #tpu.memory_space<smem>>
      %65 = arith.index_cast %64 : i32 to index
      %c0_19 = arith.constant 0 : index
      %66 = vector.load %arg2[%65, %c0_19] : memref<32x128xf32, #tpu.memory_space<vmem>>, vector<1x128xf32>
      %67 = arith.index_cast %61 : i32 to index
      %c0_20 = arith.constant 0 : index
      %68 = vector.load %arg3[%67, %c0_20] : memref<16x128xf32, #tpu.memory_space<vmem>>, vector<1x128xf32>
      tpu.vector_store %arg3[%67, %c0_20], %66 {strides = array<i32>} : memref<16x128xf32, #tpu.memory_space<vmem>>, vector<1x128xf32>,
    }
    %c2_i32_0 = arith.constant 2 : i32
    return
  }
  func.func @transform_0(%arg0: i32, %arg1: memref<16xi32, #tpu.memory_space<smem>>) -> (i32, i32) {
    %c0_i32 = arith.constant 0 : i32
    %c0_i32_0 = arith.constant 0 : i32
    %c0_i32_1 = arith.constant 0 : i32
    return %c0_i32, %c0_i32_0 : i32, i32
  }
  func.func @transform_1(%arg0: i32, %arg1: memref<16xi32, #tpu.memory_space<smem>>) -> (i32, i32) {
    %c0_i32 = arith.constant 0 : i32
    %c0_i32_0 = arith.constant 0 : i32
    return %arg0, %c0_i32 : i32, i32
  }
}

</mosaic_0001>

<bundles_post_ra>
// kernel: tpu_custom_call.1
= control target key start
LH: loop header
LB: loop body
LE: loop exit
PB: predicated region body
PF: predicated region fallthrough
CT: control target
= control target key end

     0   :  { %s311_s0 = inlined_call_operand.hbm [shape: s32[16], index: 0, kind: input, shape index: {}]   ;;  %s312_s1 = inlined_call_operand.hbm [shape: f32[32,128], index: 1, kind: input, shape index: {}]   ;;  %s313_s2 = inlined_call_operand.hbm [shape: f32[16,128], index: 2, kind: output, shape index: {}]  }
   0x1   :  { %s172_s11 = scalar_lea.hbm %s311_s0, 16 }
   0x2   :  { %p173_p0 = scmp.ne.s32.totalorder %s311_s0, %s172_s11  ;;  %p176_p1 = scmp.lt.u32.totalorder %s172_s11, %s311_s0 }
   0x4   :  { %p178_p2 = pnand %p176_p1, %p173_p0 }
   0x6   :  { %181 = shalt.err (!%p178_p2)  }
   0x7   :  { %s240_s16 = smov [#allocation3]  }
   0x8   :  { %8 = dma.hbm_to_smem %s311_s0, 16, %s240_s16, [#allocation2] }
   0x9   :  { %230 = dma.done.wait [#allocation2], 16 }
   0xa   :  { %231 = vsyncadd [#allocation2], 4294967280 }
   0xb   :  { %10 = sfence }
   0xc   :  { %11 = vsyncpa [#allocation5], 0 }
   0xd   :  { %12 = vsyncpa [#allocation6], 0  ;;  %s241_s19 = smov [#allocation4]   ;;  %s182_s23 = scalar_lea.hbm %s312_s1, 512 }
   0xe   :  { %s18_s20 = sshll.u32 %s241_s19, 4  ;;  %p183_p3 = scmp.ne.s32.totalorder %s312_s1, %s182_s23  ;;  %s19_s20 = int_to_ptr.vmem [resolvable:$true] %s18_s20 }
   0xf   :  { %p186_p4 = scmp.lt.u32.totalorder %s182_s23, %s312_s1 }
  0x11   :  { %p188_p5 = pnand %p186_p4, %p183_p3 }
  0x13   :  { %191 = shalt.err (!%p188_p5)
}
  0x14   :  { %s192_s0 = scalar_lea.vmem %s19_s20, 512  ;;  %p197_p7 = scmp.lt.s32.totalorder %s19_s20, %s19_s20 }
  0x15   :  { %p193_p6 = scmp.ne.s32.totalorder %s19_s20, %s192_s0  ;;  %p198_p8 = scmp.lt.s32.totalorder %s192_s0, %s192_s0 }
  0x17   :  { %p199_p9 = por %p198_p8, %p197_p7 }
  0x19   :  { %p200_p10 = pnand %p199_p9, %p193_p6 }
  0x1b   :  { %203 = shalt.err (!%p200_p10)
}
  0x1c   :  { %s242_s28 = smov 128   ;;  %s243_s29 = smov 8  }
  0x1d   :  { %24 = dma.hbm_to_vmem [thread:$0]  %s312_s1, 512, %s19_s20, [#allocation5], %s242_s28, %s242_s28, %s243_s29  }
  0x1e   :  { %232 = dma.done.wait [#allocation5], 512  }
  0x1f   :  { %233 = vsyncadd [#allocation5], 4294966784  ;;  %s287_s4 = smov 0  }
  0x20 LB: > { %s144_s5 = sshll.u32 %s238_s4, 3  ;;  %s34_s4 = sadd.s32 1, %s238_s4   ;;  %s238_s4 = sphi %s287_s4, %s34_s4  }
  0x21   : > { %s37_s6 = sld [smem:[#allocation3 + %s144_s5]]  ;;  %s42_s7 = sadd.s32 1, %s144_s5 }
  0x22   : > { %s49_s8 = sadd.s32 2, %s144_s5  ;;  %s44_s9 = sld [smem:[#allocation3 + %s42_s7]] }
  0x23   : > { %s51_s10 = sld [smem:[#allocation3 + %s49_s8]]  ;;  %s56_s11 = sadd.s32 3, %s144_s5 }
  0x24   : > { %s63_s12 = sadd.s32 4, %s144_s5  ;;  %s58_s13 = sld [smem:[#allocation3 + %s56_s11]] }
  0x25   : > { %s65_s1 = sld [smem:[#allocation3 + %s63_s12]]  ;;  %s70_s14 = sadd.s32 5, %s144_s5 }
  0x26   : > { %s77_s15 = sadd.s32 6, %s144_s5  ;;  %s72_s16 = sld [smem:[#allocation3 + %s70_s14]] }
  0x27   : > { %s38_s17 = scalar_lea.vmem [#allocation4], %s37_s6  ;;  %s79_s18 = sld [smem:[#allocation3 + %s77_s15]] }
  0x28   : > { %v39_v0 = vld [vmem:[%s38_s17] sm:$0x1]  ;;  %s84_s19 = sadd.s32 7, %s144_s5  ;;  %s40_s20 = scalar_lea.vmem [#allocation7], %s144_s5 }
  0x29   : > { %41 = vst [vmem:[%s40_s20] sm:$0x1] %v39_v0  ;;  %s45_s21 = scalar_lea.vmem [#allocation4], %s44_s9  ;;  %s52_s22 = scalar_lea.vmem [#allocation4], %s51_s10 }
  0x2a   : > { %v46_v1 = vld [vmem:[%s45_s21] sm:$0x1]  ;;  %s86_s23 = sld [smem:[#allocation3 + %s84_s19]]  ;;  %s59_s24 = scalar_lea.vmem [#allocation4], %s58_s13 }
  0x2b   : > { %v53_v2 = vld [vmem:[%s52_s22] sm:$0x1]  ;;  %146 = vst [vmem:[%s40_s20 + $0x1] sm:$0x1] %v46_v1  ;;  %s66_s25 = scalar_lea.vmem [#allocation4], %s65_s1  ;;  %p31_p11 = scmp.ge.s32.totalorder %s34_s4, 2  }
  0x2c   : > { %148 = vst [vmem:[%s40_s20 + $0x2] sm:$0x1] %v53_v2  ;;  %v60_v3 = vld [vmem:[%s59_s24] sm:$0x1]  ;;  %s73_s26 = scalar_lea.vmem [#allocation4], %s72_s16  ;;  %s244_s30 = smov (%p31_p11), [#allocation7]  }
  0x2d   : > { %v67_v4 = vld [vmem:[%s66_s25] sm:$0x1]  ;;  %150 = vst [vmem:[%s40_s20 + $0x3] sm:$0x1] %v60_v3  ;;  %s80_s27 = scalar_lea.vmem [#allocation4], %s79_s18  ;;  %33 = sbr.rel (!%p31_p11) target bundleno = 32 (0x20), region = 51 }
  0x2e   : > { %152 = vst [vmem:[%s40_s20 + $0x4] sm:$0x1] %v67_v4  ;;  %v74_v5 = vld [vmem:[%s73_s26] sm:$0x1]  ;;  %s96_s3 = sshll.u32 (%p31_p11), %s244_s30, 4  ;;  %s97_s3 = int_to_ptr.vmem [resolvable:$true] %s96_s3 }
  0x2f   : > { %154 = vst [vmem:[%s40_s20 + $0x5] sm:$0x1] %v74_v5  ;;  %v81_v6 = vld [vmem:[%s80_s27] sm:$0x1]  ;;  %s204_s5 = scalar_lea.vmem (%p31_p11), %s97_s3, 256  ;;  %p209_p13 = scmp.lt.s32.totalorder (%p31_p11), %s97_s3, %s97_s3 }
  0x30   : > { %156 = vst [vmem:[%s40_s20 + $0x6] sm:$0x1] %v81_v6  ;;  %s87_s0 = scalar_lea.vmem [#allocation4], %s86_s23  ;;  %p205_p12 = scmp.ne.s32.totalorder (%p31_p11), %s97_s3, %s204_s5 }
  0x31   : > { %v88_v7 = vld [vmem:[%s87_s0] sm:$0x1]  ;;  %p210_p0 = scmp.lt.s32.totalorder (%p31_p11), %s204_s5, %s204_s5 }
  0x32   : > { %158 = vst [vmem:[%s40_s20 + $0x7] sm:$0x1] %v88_v7 }
  0x33   :  { %p211_p1 = por (%p31_p11), %p210_p0, %p209_p13 }
  0x35   :  { %p212_p2 = pnand %p211_p1, %p205_p12 }
  0x37   :  { %215 = shalt.err (!%p212_p2)
}
  0x38   :  { %s216_s8 = scalar_lea.hbm %s313_s2, 256 }
  0x39   :  { %p217_p3 = scmp.ne.s32.totalorder %s313_s2, %s216_s8  ;;  %p220_p4 = scmp.lt.u32.totalorder %s216_s8, %s313_s2 }
  0x3b   :  { %p222_p5 = pnand %p220_p4, %p217_p3 }
  0x3d   :  { %225 = shalt.err (!%p222_p5)
}
  0x3e   :  { %102 = dma.vmem_to_hbm [thread:$0]  %s97_s3, 256, %s313_s2, [#allocation6], %s242_s28, %s242_s28, %s243_s29  }
  0x3f   :  { %234 = dma.done.wait [#allocation6], 256  }
  0x40   :  { %235 = vsyncadd [#allocation6], 4294967040 }
  0x41   :  { %106 = vsyncpa [#allocation5], 1 }
  0x42   :  { %107 = vsyncpa [#allocation6], 1 }

</bundles_post_ra>
